<compile_context>
chip_gen: v7x
topology: tpu7x:2x2x1
jax: 0.10.0
libtpu: 0.0.40
codegen_flags: <defaults>
</compile_context>

<pallas_src>
import math

import jax
import jax.numpy as jnp
from jax.experimental import pallas as pl
from jax.experimental.pallas import tpu as pltpu

_LANE = 128


def _round_up(x, m):
    return (x + m - 1) // m * m


def _stack_lm_head_kernel(x_ref, w_ref, o_ref):
    # x_ref: (tm, K_pad)   activation rows for depth slot d (BlockSpec-selected)
    # w_ref: (K_pad, tn)   weight tile for depth slot d (depth dim squeezed)
    # o_ref: (tm, tn)      lane-dense output tile, written exactly once
    o_ref[...] = jnp.dot(
        x_ref[...], w_ref[...], preferred_element_type=jnp.float32
    ).astype(o_ref.dtype)


def _vmem_capacity_bytes():
    try:
        cap = getattr(pltpu.get_tpu_info(), "vmem_capacity_bytes", None)
        if cap:
            return int(cap)
    except Exception:
        pass
    return 64 * 1024 * 1024  # conservative fallback = v7x per-core VMEM


def stack_lm_head(x, weight, *, compute_dtype=jnp.bfloat16, out_dtype=None):
    """StackLMHead forward: out[..., d, :] = x[..., d, :] @ weight[d].

    x: (..., depth, in_dim); weight: (depth, in_dim, out_dim).

    compute_dtype: dtype of the MXU operands (accumulation is always f32).
      Default bf16 halves the dominant weight-stream HBM traffic; store the
      parameter in bf16 so the cast below doesn't materialize a fresh copy.
      Pass jnp.float32 for bit-faithful f32 semantics.
    out_dtype: logits dtype (default x.dtype).
    """
    depth, in_dim, out_dim = weight.shape
    assert x.shape[-2:] == (depth, in_dim), (x.shape, weight.shape)
    batch_shape = x.shape[:-2]
    m = math.prod(batch_shape)

    if out_dtype is None:
        out_dtype = x.dtype
    if compute_dtype is not None:
        x = x.astype(compute_dtype)
        weight = weight.astype(compute_dtype)
    csize = jnp.dtype(x.dtype).itemsize
    osize = jnp.dtype(out_dtype).itemsize

    # --- tile sizes --------------------------------------------------------
    # sublane granularity: sub-32-bit dtypes pack along sublanes (bf16 -> 16)
    sub = 8 * max(1, 4 // csize)
    k_pad = _round_up(in_dim, _LANE)
    n_pad128 = _round_up(out_dim, _LANE)

    vmem_cap = _vmem_capacity_bytes()           # 128 MiB v5e/v6e, 64 MiB v7x
    vmem_budget = vmem_cap * 3 // 4

    def _footprint(tm, tn):
        # double-buffered x, weight and output blocks
        return 2 * ((tm * k_pad + k_pad * tn) * csize + tm * tn * osize)

    def _max_tm(tn):
        avail = vmem_budget // 2 - k_pad * tn * csize
        denom = k_pad * csize + tn * osize
        if avail <= 0:
            return 0
        return (avail // denom) // sub * sub

    # lane-dense N tile: up to 512 wide; prefer to keep tn >= 256 (feeds the
    # 256-wide MXU, bigger contiguous weight-DMA rows / vst slabs).
    tn = min(512, n_pad128)
    tn_floor = min(256, n_pad128)
    tm = _max_tm(tn)
    while tm < sub and tn > tn_floor:            # shrink tm first, then tn
        tn -= _LANE
        tm = _max_tm(tn)
    while tm < sub and tn > _LANE:               # only if forced by huge K
        tn -= _LANE
        tm = _max_tm(tn)
    if tm < sub:
        # TODO(synk): extremely large in_dim would need a K grid axis + f32
        # scratch accumulator; fall back to the minimum tile.
        tm = sub
    # Weight HBM re-read count is exactly m_pad/tm: give tm the whole budget
    # and collapse the M axis entirely when M is small.
    tm = min(tm, _round_up(m, sub))

    m_pad = _round_up(m, tm)
    n_pad = _round_up(out_dim, tn)
    n_blocks = n_pad // tn

    # --- layout plumbing: free reshapes; pad only when shapes are ragged ---
    x2 = x.reshape(m, depth, in_dim)
    if k_pad != in_dim or m_pad != m:
        x2 = jnp.pad(x2, ((0, m_pad - m), (0, 0), (0, k_pad - in_dim)))
    x2 = x2.reshape(m_pad, depth * k_pad)        # free collapse (K_pad % 128 == 0)

    w = weight
    if k_pad != in_dim or n_pad != out_dim:
        # NOTE: for ragged parameter shapes this pad materializes a second
        # weight copy each call; pre-pad the parameter once outside the hot
        # path in production.
        w = jnp.pad(w, ((0, 0), (0, k_pad - in_dim), (0, n_pad - out_dim)))

    footprint = _footprint(tm, tn)
    vmem_limit = int(min(vmem_cap * 7 // 8,                    # < physical VMEM
                         max(footprint + (8 << 20), 32 << 20)))

    out = pl.pallas_call(
        _stack_lm_head_kernel,
        out_shape=jax.ShapeDtypeStruct((m_pad, depth * n_pad), out_dtype),
        grid_spec=pltpu.PrefetchScalarGridSpec(
            num_scalar_prefetch=0,
            # i (large M axis) outermost -> balanced v7x 2-TC split;
            # j innermost -> x tile resident while weight tiles stream.
            grid=(m_pad // tm, depth, n_pad // tn),
            in_specs=[
                # per-depth K-slice of x selected via the column-block index
                pl.BlockSpec((tm, k_pad), lambda i, d, j: (i, d)),
                # depth dim squeezed: kernel receives a 2-D (K_pad, tn) tile
                pl.BlockSpec((pl.Squeezed(), k_pad, tn),
                             lambda i, d, j: (d, 0, j)),
            ],
            # output written directly in (M, depth, N) layout flattened to
            # (M, depth*N_pad): column-block index = d * n_blocks + j,
            # so every store is a dense, unmasked (tm, tn) slab.
            out_specs=pl.BlockSpec(
                (tm, tn), lambda i, d, j: (i, d * n_blocks + j)
            ),
        ),
        compiler_params=pltpu.CompilerParams(
            dimension_semantics=("parallel", "parallel", "parallel"),
            vmem_limit_bytes=vmem_limit,
        ),
    )(x2, w)

    out = out.reshape(m_pad, depth, n_pad)       # free
    if m_pad != m or n_pad != out_dim:
        out = out[:m, :, :out_dim]
    return out.reshape(*batch_shape, depth, out_dim)


if __name__ == "__main__":
    # --- aligned shapes ---
    B, T, depth, in_dim, out_dim = 2, 8, 4, 128, 256
    key = jax.random.PRNGKey(0)
    kx, kw = jax.random.split(key)
    x = jax.random.normal(kx, (B, T, depth, in_dim), dtype=jnp.float32)
    # deterministic init matching nn.Parameter(in_dim**-0.5 * randn(...))
    weight = (in_dim ** -0.5) * jax.random.normal(
        kw, (depth, in_dim, out_dim), dtype=jnp.float32
    )
    ref = jnp.einsum("btdi,dio->btdo", x, weight,
                     precision=jax.lax.Precision.HIGHEST)

    # f32 streaming path (bit-faithful to the PyTorch module)
    out_f32 = jax.block_until_ready(
        stack_lm_head(x, weight, compute_dtype=jnp.float32))
    assert out_f32.shape == (B, T, depth, out_dim), out_f32.shape
    assert jnp.allclose(out_f32, ref, atol=2e-3, rtol=2e-3), "f32 mismatch"

    # default bf16 weight-streaming path (f32 accumulation) — looser tolerance
    out_bf = jax.block_until_ready(stack_lm_head(x, weight))
    assert out_bf.shape == (B, T, depth, out_dim), out_bf.shape
    assert out_bf.dtype == x.dtype
    assert jnp.allclose(out_bf, ref, atol=1e-1, rtol=1e-1), "bf16 mismatch"

    # --- ragged shapes (exercise the padding path) ---
    d2, k2, n2, b2, t2 = 3, 96, 200, 2, 5
    kx2, kw2 = jax.random.split(jax.random.PRNGKey(0))
    x_r = jax.random.normal(kx2, (b2, t2, d2, k2), dtype=jnp.float32)
    w_r = (k2 ** -0.5) * jax.random.normal(kw2, (d2, k2, n2), dtype=jnp.float32)
    out_r = jax.block_until_ready(
        stack_lm_head(x_r, w_r, compute_dtype=jnp.float32))
    ref_r = jnp.einsum("btdi,dio->btdo", x_r, w_r,
                       precision=jax.lax.Precision.HIGHEST)
    assert out_r.shape == (b2, t2, d2, n2), out_r.shape
    assert jnp.allclose(out_r, ref_r, atol=2e-3, rtol=2e-3), "ragged mismatch"

    print("KERNEL_OK")
</pallas_src>

<mosaic_0001>
module attributes {stable_mosaic.version = 11 : i64} {
  func.func @_stack_lm_head_kernel(%arg0: i32, %arg1: i32, %arg2: i32, %arg3: memref<16x128xf32, #tpu.memory_space<vmem>>, %arg4: memref<1x128x256xf32, #tpu.memory_space<vmem>>, %arg5: memref<16x256xf32, #tpu.memory_space<vmem>>) attributes {dimension_semantics = [#tpu.dimension_semantics<parallel>, #tpu.dimension_semantics<parallel>, #tpu.dimension_semantics<parallel>], iteration_bounds = array<i64: 1, 4, 1>, scalar_prefetch = 0 : i64, scratch_operands = 0 : i64, tpu.core_type = #tpu.core_type<tc>, window_params = [{transform_indices = @transform_0, window_bounds = array<i64: 16, 128>}, {transform_indices = @transform_1, window_bounds = array<i64: 1, 128, 256>}, {transform_indices = @transform_2, window_bounds = array<i64: 16, 256>}]} {
    %c0 = arith.constant 0 : index
    %c0_0 = arith.constant 0 : index
    %0 = vector.load %arg3[%c0, %c0_0] : memref<16x128xf32, #tpu.memory_space<vmem>>, vector<16x128xf32>
    %c0_1 = arith.constant 0 : index
    %c0_2 = arith.constant 0 : index
    %c0_3 = arith.constant 0 : index
    %1 = vector.load %arg4[%c0_1, %c0_2, %c0_3] : memref<1x128x256xf32, #tpu.memory_space<vmem>>, vector<1x128x256xf32>
    %2 = vector.shape_cast %1 : vector<1x128x256xf32> to vector<128x256xf32>
    %cst = arith.constant dense<0.000000e+00> : vector<16x256xf32>
    %3 = tpu.matmul %0, %2, %cst {dimension_numbers = #tpu.dot_dimension_numbers<[1], [0], [0], [1], [0, 0, 1, 1], [], []>} : vector<16x128xf32>, vector<128x256xf32>, vector<16x256xf32> -> vector<16x256xf32>
    %c0_4 = arith.constant 0 : index
    %c0_5 = arith.constant 0 : index
    %4 = vector.load %arg5[%c0_4, %c0_5] : memref<16x256xf32, #tpu.memory_space<vmem>>, vector<16x256xf32>
    tpu.vector_store %arg5[%c0_4, %c0_5], %3 {strides = array<i32>} : memref<16x256xf32, #tpu.memory_space<vmem>>, vector<16x256xf32>,
    return
  }
  func.func @transform_0(%arg0: i32, %arg1: i32, %arg2: i32) -> (i32, i32) {
    %c0_i32 = arith.constant 0 : i32
    return %arg0, %arg1 : i32, i32
  }
  func.func @transform_1(%arg0: i32, %arg1: i32, %arg2: i32) -> (i32, i32, i32) {
    %c0_i32 = arith.constant 0 : i32
    %c0_i32_0 = arith.constant 0 : i32
    return %arg1, %c0_i32, %arg2 : i32, i32, i32
  }
  func.func @transform_2(%arg0: i32, %arg1: i32, %arg2: i32) -> (i32, i32) {
    %c1_i32 = arith.constant 1 : i32
    %0 = arith.muli %arg1, %c1_i32 : i32
    %1 = arith.addi %0, %arg2 : i32
    %c0_i32 = arith.constant 0 : i32
    return %arg0, %1 : i32, i32
  }
}

</mosaic_0001>

<bundles_post_ra>
// kernel: tpu_custom_call.1
= control target key start
LH: loop header
LB: loop body
LE: loop exit
PB: predicated region body
PF: predicated region fallthrough
CT: control target
= control target key end

     0   :  { %7 = vsyncpa [#allocation3], 0  ;;  %s1066_s0 = inlined_call_operand.hbm [shape: f32[16,512], index: 0, kind: input, shape index: {}]   ;;  %s1067_s1 = inlined_call_operand.hbm [shape: f32[4,128,256], index: 1, kind: input, shape index: {}]   ;;  %s1068_s2 = inlined_call_operand.hbm [shape: f32[16,1024], index: 2, kind: output, shape index: {}]  }
   0x1   :  { %9 = vsyncpa [#allocation3 + $0x1], 0 }
   0x2   :  { %10 = vsyncpa [#allocation6], 0 }
   0x3   :  { %12 = vsyncpa [#allocation6 + $0x1], 0 }
   0x4   :  { %13 = vsyncpa [#allocation4], 0 }
   0x5   :  { %15 = vsyncpa [#allocation4 + $0x1], 0  ;;  %s806_s9 = smov 0   ;;  %s808_s10 = smov 0  }
   0x6   :  { %s810_s11 = smov 0   ;;  %s812_s12 = smov 0  }
   0x7   :  { %s814_s13 = smov 0   ;;  %s816_s14 = smov 0  }
   0x8 LB: > { %s487_s15 = sadd.s32 4294967295, %s777_s14   ;;  %s488_s16 = sadd.s32 4294967294, %s777_s14   ;;  %s777_s14 = sphi %s816_s14, %s21_s14   ;;  %s773_s13 = sphi %s814_s13, %s1084_s13   ;;  %s769_s12 = sphi %s812_s12, %s1083_s12   ;;  %s765_s11 = sphi %s810_s11, %s1082_s11   ;;  %s761_s10 = sphi %s808_s10, %s1081_s10   ;;  %s757_s9 = sphi %s806_s9, %s1080_s9  }
   0x9   : > { %s36_s17 = sadd.s32 1, %s773_s13  ;;  %s49_s18 = sadd.s32 1, %s765_s11 }
   0xa   : > { %p38_p0 = scmp.ge.s32.totalorder %s36_s17, 4  ;;  %p56_p1 = scmp.ne.s32.totalorder %s765_s11, %s761_s10 }
   0xb   : > { %p57_p2 = scmp.eq.s32.totalorder %s777_s14, 0  ;;  %p62_p3 = scmp.ne.s32.totalorder %s761_s10, %s757_s9 }
   0xc   : > { %s1086_s17 = smov (%p38_p0, %s36_s17), 0  ;;  %p63_p5 = scmp.eq.s32.totalorder %s487_s15, 0 }
   0xd   : > { %p847_p4 = por %p57_p2, %p56_p1  ;;  %s45_s20 = ssub.s32 %s773_s13, %s1086_s17 }
   0xe   : > { %p118_p6 = scmp.eq.s32.totalorder %s487_s15, 3  ;;  %p47_p7 = scmp.eq.s32.totalorder %s45_s20, 0 }
   0xf   : > { %p853_p8 = por %p63_p5, %p62_p3  ;;  %p124_p10 = scmp.eq.s32.totalorder %s488_s16, 3 }
  0x10   : > { %p857_p9 = por %p118_p6, %p56_p1  ;;  %p572_p12 = scmp.lt.s32.totalorder %s777_s14, 4 }
  0x11   : > { %s1072_s21 = scalar_select %p853_p8, 1, 0 }
  0x12   : > { %s1073_s22 = scalar_select %p857_p9, 1, 0 }
  0x13   : > { %s862_s23 = scalar_select %p47_p7, %s765_s11, %s49_s18  }
  0x14   : > { %p864_p11 = por %p124_p10, %p62_p3  ;;  %s870_s25 = sand.u32 1, %s765_s11  }
  0x15   : > { %s491_s26 = sshll.u32 %s870_s25, 4  ;;  %s492_s27 = sshll.u32 %s773_s13, 7 }
  0x16   : > { %s1074_s24 = scalar_select %p864_p11, 1, 0 }
  0x17   : > { %s877_s30 = scalar_lea.hbm %s1066_s0, %s492_s27  ;;  %s148_s3 = scalar_lea.vmem [#allocation2], %s491_s26 }
  0x18   : > { %s157_s4 = sshll.u32 %s148_s3, 4  ;;  %p883_p13 = pnand %p572_p12, %p847_p4  ;;  %s879_s4 = int_to_ptr.vmem [resolvable:$true] %s157_s4 }
  0x19   : > { %s145_s6 = scalar_lea.sflag [#allocation3], %s870_s25  ;;  %s631_s7 = scalar_lea.hbm %s877_s30, 256 }
  0x1a   : > { %p632_p0 = scmp.ne.s32.totalorder %s877_s30, %s631_s7  ;;  %p633_p1 = pneg %p883_p13 }
  0x1b   : > { %s636_s16 = scalar_lea.hbm %s1066_s0, 1024  ;;  %p637_p4 = scmp.lt.u32.totalorder %s877_s30, %s1066_s0 }
  0x1c   : > { %p634_p2 = pnand %p633_p1, %p632_p0  ;;  %p638_p5 = scmp.lt.u32.totalorder %s636_s16, %s631_s7 }
  0x1d   : > { %p640_p7 = scmp.lt.u32.totalorder %s631_s7, %s877_s30 }
  0x1e   : > { %p635_p3 = pneg %p634_p2  ;;  %p639_p6 = por %p638_p5, %p637_p4 }
  0x20   : > { %p641_p10 = por %p640_p7, %p639_p6 }
  0x22   : > { %p642_p12 = pnand %p641_p10, %p635_p3 }
  0x24   : > { %645 = shalt.err (!%p642_p12)
}
  0x25   : > { %s646_s20 = scalar_lea.vmem %s879_s4, 256  ;;  %s779_s26 = smov [#allocation2]  }
  0x26   : > { %p647_p0 = scmp.ne.s32.totalorder %s879_s4, %s646_s20  ;;  %s651_s27 = sshll.u32 %s779_s26, 4  ;;  %s652_s27 = int_to_ptr.vmem [resolvable:$false] %s651_s27 }
  0x27   : > { %s653_s28 = scalar_lea.vmem %s652_s27, 512  ;;  %p654_p9 = scmp.lt.s32.totalorder %s879_s4, %s652_s27 }
  0x28   : > { %p649_p2 = pnand %p647_p0, %p633_p1  ;;  %p655_p4 = scmp.lt.s32.totalorder %s653_s28, %s646_s20 }
  0x2a   : > { %p650_p11 = pneg %p649_p2  ;;  %p656_p5 = por %p655_p4, %p654_p9 }
  0x2c   : > { %p657_p6 = pnand %p656_p5, %p650_p11 }
  0x2e   : > { %660 = shalt.err (!%p657_p6)
}
  0x2f   : > { %s780_s29 = smov 512   ;;  %s781_s3 = smov 128  }
  0x30   : > { %s782_s7 = smov 8   ;;  %p496_p3 = scmp.ge.s32.totalorder %s777_s14, 1 }
  0x31   : > { %564 = dma.hbm_to_vmem [thread:$0]  (!%p883_p13), %s877_s30, 256, %s879_s4, %s145_s6, %s780_s29, %s781_s3, %s782_s7  }
  0x32   : > { %p188_p9 = scmp.lt.s32.totalorder %s777_s14, 5  ;;  %s493_s8 = sshll.u32 %s870_s25, 8 }
  0x33   : > { %s505_s16 = sshll.u32 %s773_s13, 12  ;;  %s171_s18 = scalar_lea.vmem [#allocation5], %s493_s8 }
  0x34   : > { %p918_p11 = pnand %p496_p3, %p188_p9  ;;  %s180_s19 = sshll.u32 %s171_s18, 4  ;;  %s928_s19 = int_to_ptr.vmem [resolvable:$true] %s180_s19 }
  0x35   : > { %s926_s27 = scalar_lea.hbm %s1067_s1, %s505_s16  ;;  %s168_s30 = scalar_lea.sflag [#allocation6], %s870_s25 }
  0x36   : > { %s661_s4 = scalar_lea.hbm %s926_s27, 4096  ;;  %s666_s29 = scalar_lea.hbm %s1067_s1, 16384 }
  0x37   : > { %p662_p7 = scmp.ne.s32.totalorder %s926_s27, %s661_s4  ;;  %p667_p0 = scmp.lt.u32.totalorder %s926_s27, %s1067_s1 }
  0x38   : > { %p668_p2 = scmp.lt.u32.totalorder %s666_s29, %s661_s4  ;;  %p670_p5 = scmp.lt.u32.totalorder %s661_s4, %s926_s27 }
  0x39   : > { %p664_p10 = pnand %p662_p7, %p633_p1 }
  0x3a   : > { %p669_p4 = por %p668_p2, %p667_p0 }
  0x3b   : > { %p665_p12 = pneg %p664_p10 }
  0x3c   : > { %p671_p6 = por %p670_p5, %p669_p4 }
  0x3e   : > { %p672_p3 = pnand %p671_p6, %p665_p12 }
  0x40   : > { %675 = shalt.err (!%p672_p3)
}
  0x41   : > { %s676_s8 = scalar_lea.vmem %s928_s19, 4096  ;;  %s783_s16 = smov [#allocation5]  }
  0x42   : > { %p677_p9 = scmp.ne.s32.totalorder %s928_s19, %s676_s8  ;;  %s681_s18 = sshll.u32 %s783_s16, 4  ;;  %s682_s18 = int_to_ptr.vmem [resolvable:$false] %s681_s18 }
  0x43   : > { %s683_s20 = scalar_lea.vmem %s682_s18, 8192  ;;  %p684_p8 = scmp.lt.s32.totalorder %s928_s19, %s682_s18 }
  0x44   : > { %p679_p7 = pnand %p677_p9, %p633_p1  ;;  %p685_p0 = scmp.lt.s32.totalorder %s683_s20, %s676_s8 }
  0x46   : > { %p680_p10 = pneg %p679_p7  ;;  %p686_p2 = por %p685_p0, %p684_p8 }
  0x48   : > { %p687_p4 = pnand %p686_p2, %p680_p10 }
  0x4a   : > { %690 = shalt.err (!%p687_p4)
}
  0x4b   : > { %s784_s26 = smov 256   ;;  %s785_s4 = smov 16  }
  0x4c   : > { %567 = dma.hbm_to_vmem [thread:$0]  (!%p883_p13), %s926_s27, 4096, %s928_s19, %s168_s30, %s784_s26, %s784_s26, %s785_s4  }
  0x4d   : > { %192 = sbr.rel (%p918_p11) target bundleno = 352 (0x160), region = 28  ;;  %s959_s6 = sand.u32 (!%p918_p11), 1, %s761_s10  }
  0x4e   : > { %s497_s28 = sshll.u32 (!%p918_p11), %s959_s6, 4  ;;  %s195_s29 = scalar_lea.sflag (!%p918_p11), [#allocation3], %s959_s6 }
  0x4f   : > { %s963_s3 = scalar_lea.vmem (!%p918_p11), [#allocation2], %s497_s28  ;;  %p1077_p8 = scmp.ne.s32.totalorder (!%p918_p11), %s1072_s21, 0 }
  0x54   : > { %744 = dma.done.wait (%p1077_p8), %s195_s29, 256  }
  0x55   : > { %746 = vsyncadd (%p1077_p8), %s195_s29, 4294967040  ;;  %s498_s25 = sshll.u32 %s959_s6, 8  ;;  %s204_s5 = scalar_lea.sflag [#allocation6], %s959_s6 }
  0x56   : > { %s971_s15 = scalar_lea.vmem [#allocation5], %s498_s25 }
  0x57   : > { %748 = dma.done.wait (%p1077_p8), %s204_s5, 4096  }
  0x58   : > { %750 = vsyncadd (%p1077_p8), %s204_s5, 4294963200  ;;  %v786_v0 = vmov 0.0   ;;  %v241_v1 = vld [vmem:[%s971_s15 + $0x8] sm:$0xff]  ;;  %v243_v2 = vld [vmem:[%s971_s15 + $0x18] sm:$0xff]  ;;  %s499_s21 = sshll.u32 %s959_s6, 5  ;;  %s506_s30 = sshll.u32 %s769_s12, 8 }
  0x59   : > { %336 = vmatprep.mubr.f32.mxu0 %v786_v0  ;;  %342 = vmatprep.mubr.f32.mxu1 %v786_v0  ;;  %v240_v3 = vld [vmem:[%s971_s15] sm:$0xff]  ;;  %v507_v4 = vpack.c.bf16 %v243_v2, %v241_v1  ;;  %v242_v5 = vld [vmem:[%s971_s15 + $0x10] sm:$0xff]  ;;  %v245_v6 = vld [vmem:[%s971_s15 + $0x28] sm:$0xff]  ;;  %s232_s19 = scalar_lea.vmem [#allocation7], %s499_s21  ;;  %s1018_s16 = scalar_lea.hbm %s1068_s2, %s506_s30 }
  0x5a   : > { %v247_v7 = vld [vmem:[%s971_s15 + $0x38] sm:$0xff]  ;;  %v509_v8 = vpack.c.bf16 %v242_v5, %v240_v3  ;;  %v244_v10 = vld [vmem:[%s971_s15 + $0x20] sm:$0xff]  ;;  %v246_v11 = vld [vmem:[%s971_s15 + $0x30] sm:$0xff]  ;;  %s371_s27 = sshll.u32 %s232_s19, 4  ;;  %s354_s18 = scalar_lea.sflag [#allocation4], %s959_s6  ;;  %s1013_s27 = int_to_ptr.vmem [resolvable:$true] %s371_s27 }
  0x5b   : > { %v511_v9 = vpack.c.bf16 %v247_v7, %v245_v6  ;;  %v249_v12 = vld [vmem:[%s971_s15 + $0x48] sm:$0xff]  ;;  %508 = vmatprep.subr.bf16.mxu0 %v507_v4  ;;  %539 = vmatprep.subr.bf16.mxu1 %v507_v4  ;;  %v251_v13 = vld [vmem:[%s971_s15 + $0x58] sm:$0xff]  ;;  %v513_v14 = vpack.c.bf16 %v246_v11, %v244_v10  ;;  %v248_v16 = vld [vmem:[%s971_s15 + $0x40] sm:$0xff]  ;;  %s691_s12 = scalar_lea.vmem %s1013_s27, 512  ;;  %p1078_p1 = scmp.ne.s32.totalorder %s1073_s22, 0 }
  0x5c   : > { %510 = vmatpush1.bf16.msra.mxu0 %v509_v8  ;;  %547 = vmatpush1.bf16.msra.mxu1 %v509_v8  ;;  %v515_v15 = vpack.c.bf16 %v251_v13, %v249_v12  ;;  %v250_v17 = vld [vmem:[%s971_s15 + $0x50] sm:$0xff]  ;;  %v253_v18 = vld [vmem:[%s971_s15 + $0x68] sm:$0xff]  ;;  %v255_v19 = vld [vmem:[%s971_s15 + $0x78] sm:$0xff]  ;;  %p692_p13 = scmp.ne.s32.totalorder %s1013_s27, %s691_s12  ;;  %s787_s20 = smov [#allocation7]  }
  0x5d   : > { %512 = vmatprep.subr.bf16.mxu0 %v511_v9  ;;  %540 = vmatprep.subr.bf16.mxu1 %v511_v9  ;;  %v517_v20 = vpack.c.bf16 %v250_v17, %v248_v16  ;;  %v519_v21 = vpack.c.bf16 %v255_v19, %v253_v18  ;;  %v252_v22 = vld [vmem:[%s971_s15 + $0x60] sm:$0xff]  ;;  %v254_v23 = vld [vmem:[%s971_s15 + $0x70] sm:$0xff]  ;;  %v257_v24 = vld [vmem:[%s971_s15 + $0x88] sm:$0xff]  ;;  %s695_s26 = sshll.u32 %s787_s20, 4  ;;  %s696_s26 = int_to_ptr.vmem [resolvable:$false] %s695_s26 }
  0x5e   : > { %v259_v25 = vld [vmem:[%s971_s15 + $0x98] sm:$0xff]  ;;  %v521_v26 = vpack.c.bf16 %v254_v23, %v252_v22  ;;  %v256_v28 = vld [vmem:[%s971_s15 + $0x80] sm:$0xff]  ;;  %v258_v29 = vld [vmem:[%s971_s15 + $0x90] sm:$0xff]  ;;  %p693_p11 = pnand %p692_p13, %p1078_p1  ;;  %s697_s4 = scalar_lea.vmem %s696_s26, 1024 }
  0x5f   : > { %v523_v27 = vpack.c.bf16 %v259_v25, %v257_v24  ;;  %v261_v30 = vld [vmem:[%s971_s15 + $0xa8] sm:$0xff]  ;;  %v263_v31 = vld [vmem:[%s971_s15 + $0xb8] sm:$0xff]  ;;  %v525_v32 = vpack.c.bf16 %v258_v29, %v256_v28  ;;  %v260_v34 = vld [vmem:[%s971_s15 + $0xa0] sm:$0xff]  ;;  %p698_p5 = scmp.lt.s32.totalorder %s1013_s27, %s696_s26  ;;  %p699_p6 = scmp.lt.s32.totalorder %s697_s4, %s691_s12 }
  0x60   : > { %514 = vmatpush1.bf16.msra.mxu0 %v513_v14  ;;  %548 = vmatpush1.bf16.msra.mxu1 %v513_v14  ;;  %v527_v33 = vpack.c.bf16 %v263_v31, %v261_v30  ;;  %v262_v35 = vld [vmem:[%s971_s15 + $0xb0] sm:$0xff]  ;;  %v265_v36 = vld [vmem:[%s971_s15 + $0xc8] sm:$0xff]  ;;  %v267_v37 = vld [vmem:[%s971_s15 + $0xd8] sm:$0xff]  ;;  %p694_p12 = pneg %p693_p11 }
  0x61   : > { %516 = vmatprep.subr.bf16.mxu0 %v515_v15  ;;  %541 = vmatprep.subr.bf16.mxu1 %v515_v15  ;;  %v529_v38 = vpack.c.bf16 %v262_v35, %v260_v34  ;;  %v531_v39 = vpack.c.bf16 %v267_v37, %v265_v36  ;;  %v264_v40 = vld [vmem:[%s971_s15 + $0xc0] sm:$0xff]  ;;  %v266_v41 = vld [vmem:[%s971_s15 + $0xd0] sm:$0xff]  ;;  %v269_v42 = vld [vmem:[%s971_s15 + $0xe8] sm:$0xff]  ;;  %p700_p3 = por %p699_p6, %p698_p5 }
  0x62   : > { %v271_v43 = vld [vmem:[%s971_s15 + $0xf8] sm:$0xff]  ;;  %v533_v44 = vpack.c.bf16 %v266_v41, %v264_v40  ;;  %v268_v46 = vld [vmem:[%s971_s15 + $0xe0] sm:$0xff]  ;;  %v270_v47 = vld [vmem:[%s971_s15 + $0xf0] sm:$0xff] }
  0x63   : > { %v535_v45 = vpack.c.bf16 %v271_v43, %v269_v42  ;;  %v537_v48 = vpack.c.bf16 %v270_v47, %v268_v46  ;;  %v238_v49 = vld [vmem:[%s963_s3] sm:$0xff]  ;;  %v239_v50 = vld [vmem:[%s963_s3 + $0x8] sm:$0xff]  ;;  %p701_p9 = pnand %p700_p3, %p694_p12 }
  0x64   : > { %518 = vmatpush1.bf16.msra.mxu0 %v517_v20  ;;  %549 = vmatpush1.bf16.msra.mxu1 %v517_v20 }
  0x65   : > { %520 = vmatprep.subr.bf16.mxu0 %v519_v21  ;;  %542 = vmatprep.subr.bf16.mxu1 %v519_v21 }
  0x68   : > { %522 = vmatpush1.bf16.msra.mxu0 %v521_v26  ;;  %550 = vmatpush1.bf16.msra.mxu1 %v521_v26 }
  0x69   : > { %524 = vmatprep.subr.bf16.mxu0 %v523_v27  ;;  %543 = vmatprep.subr.bf16.mxu1 %v523_v27 }
  0x6c   : > { %526 = vmatpush1.bf16.msra.mxu0 %v525_v32  ;;  %551 = vmatpush1.bf16.msra.mxu1 %v525_v32 }
  0x6d   : > { %528 = vmatprep.subr.bf16.mxu0 %v527_v33  ;;  %544 = vmatprep.subr.bf16.mxu1 %v527_v33 }
  0x70   : > { %530 = vmatpush1.bf16.msra.mxu0 %v529_v38  ;;  %552 = vmatpush1.bf16.msra.mxu1 %v529_v38 }
  0x71   : > { %532 = vmatprep.subr.bf16.mxu0 %v531_v39  ;;  %545 = vmatprep.subr.bf16.mxu1 %v531_v39 }
  0x74   : > { %534 = vmatpush1.bf16.msra.mxu0 %v533_v44  ;;  %553 = vmatpush1.bf16.msra.mxu1 %v533_v44 }
  0x75   : > { %536 = vmatprep.subr.bf16.mxu0 %v535_v45  ;;  %546 = vmatprep.subr.bf16.mxu1 %v535_v45 }
  0x78   : > { %538 = vmatpush1.bf16.msra.mxu0 %v537_v48  ;;  %554 = vmatpush1.bf16.msra.mxu1 %v537_v48 }
  0x7b   : > { %337 = vmatmul.mubr.f32.vlgmr.msra.gmra.mrb[0].mxu0 %v238_v49  ;;  %343 = vmatmul.mubr.f32.vlgmr.msra.gmra.mrb[0].mxu1 %v239_v50 }
 0x14e   : > { %v338_v51 = vpop.f32.mrb[0].mxu0  ;;  %v344_v52 = vpop.f32.mrb[0].mxu1 }
 0x14f   : > { %349 = vst [vmem:[%s232_s19] sm:$0xff] %v338_v51  ;;  %351 = vst [vmem:[%s232_s19 + $0x10] sm:$0xff] %v344_v52  ;;  %v340_v53 = vpop.f32.mrb[1].mxu0  ;;  %v346_v54 = vpop.f32.mrb[1].mxu1 }
 0x150   : > { %350 = vst [vmem:[%s232_s19 + $0x8] sm:$0xff] %v340_v53  ;;  %352 = vst [vmem:[%s232_s19 + $0x18] sm:$0xff] %v346_v54 }
 0x151   : > { %704 = shalt.err (!%p701_p9)
}
 0x152   : > { %s705_s28 = scalar_lea.hbm %s1018_s16, 512  ;;  %s709_s25 = scalar_lea.hbm %s1068_s2, 2048 }
 0x153   : > { %p706_p7 = scmp.ne.s32.totalorder %s1018_s16, %s705_s28  ;;  %p710_p2 = scmp.lt.u32.totalorder %s1018_s16, %s1068_s2 }
 0x154   : > { %p711_p4 = scmp.lt.u32.totalorder %s709_s25, %s705_s28  ;;  %p713_p13 = scmp.lt.u32.totalorder %s705_s28, %s1018_s16 }
 0x155   : > { %p707_p10 = pnand %p706_p7, %p1078_p1 }
 0x156   : > { %p712_p8 = por %p711_p4, %p710_p2 }
 0x157   : > { %p708_p0 = pneg %p707_p10 }
 0x158   : > { %p714_p11 = por %p713_p13, %p712_p8 }
 0x15a   : > { %p715_p12 = pnand %p714_p11, %p708_p0 }
 0x15c   : > { %718 = shalt.err (!%p715_p12)
}
 0x15d   : > { %s788_s21 = smov 256   ;;  %s789_s19 = smov 1024  }
 0x15e   : > { %s790_s30 = smov 16  }
 0x15f   : > { %559 = dma.vmem_to_hbm [thread:$0]  (%p1078_p1), %s1013_s27, 512, %s1018_s16, %s354_s18, %s788_s21, %s789_s19, %s790_s30  }
 0x160 PF: > { %p573_p5 = scmp.ge.s32.totalorder %s777_s14, 2  ;;  %s386_s7 = sand.u32 1, %s757_s9  }
 0x161   : > { %p1079_p6 = scmp.ne.s32.totalorder %s1074_s24, 0  ;;  %s387_s8 = scalar_lea.sflag [#allocation4], %s386_s7 }
 0x163   : > { %p569_p3 = pnand %p573_p5, %p1079_p6 }
 0x165   : > { %752 = dma.done.wait (!%p569_p3), %s387_s8, 512  }
 0x166   : > { %754 = vsyncadd (!%p569_p3), %s387_s8, 4294966784  ;;  %s21_s14 = sadd.s32 1, %s777_s14   ;;  %s1080_s9 = smov %s761_s10 }
 0x167   : > { %p18_p9 = scmp.ge.s32.totalorder %s21_s14, 6   ;;  %s1081_s10 = smov %s765_s11 }
 0x168   : > { %s1082_s11 = smov %s862_s23  ;;  %s1083_s12 = smov %s773_s13 }
 0x169   : > { %s1084_s13 = smov %s1086_s17  ;;  %20 = sbr.rel (!%p18_p9) target bundleno = 8 (0x8), region = 86 }
 0x170   :  { %392 = vsyncpa [#allocation3], 1 }
 0x171   :  { %394 = vsyncpa [#allocation3 + $0x1], 1 }
 0x172   :  { %395 = vsyncpa [#allocation6], 1 }
 0x173   :  { %397 = vsyncpa [#allocation6 + $0x1], 1 }
 0x174   :  { %398 = vsyncpa [#allocation4], 1 }
 0x175   :  { %400 = vsyncpa [#allocation4 + $0x1], 1 }

</bundles_post_ra>
